<compile_context>
chip_gen: v6e
topology: v6e:2x2x1
jax: 0.10.0
libtpu: 0.0.40
codegen_flags: <defaults>
</compile_context>

<pallas_src>
import functools
import math

import jax
import jax.numpy as jnp
from jax.experimental import pallas as pl
from jax.experimental.pallas import tpu as pltpu


# ----------------------------- VMEM budget / tiling helpers -----------------

def _vmem_budget_bytes():
    """Generation-aware VMEM budget (~0.75x physical capacity)."""
    try:
        info = pltpu.get_tpu_info()
        cap = int(getattr(info, "vmem_capacity_bytes", 0))
        if cap > 0:
            return int(0.75 * cap)
    except Exception:
        pass
    # Conservative fallback, safe on every generation (v7x has 64 MiB physical).
    return 48 * 1024 * 1024


def _row_tile(m, din, budget, target=512):
    """Row tile for the projection kernel: prefer big tiles (HBM roofline), but keep
    >=2 grid steps when possible (v7x has 2 TensorCores) and stay inside the VMEM budget."""
    if m <= 8:
        return m
    upper = min(target, m // 2) if m >= 16 else m
    for t in (1024, 512, 256, 128, 64, 32, 16, 8):
        if t <= upper and m % t == 0 and 2 * t * din * 4 <= budget // 4:
            return t
    return m


def _col_tile(dout, din, tm, budget):
    """Dout tile for the fused QKV projection (streams the weight instead of holding it
    fully VMEM-resident)."""
    def live(tn):
        return (2 * tm * din * 4        # x tile (f32), double-buffered
                + 2 * 3 * din * tn * 2  # weight tile (bf16)
                + 2 * 3 * tn * 4        # bias tile (f32)
                + 2 * 3 * tm * tn * 4)  # output tile (f32)
    if live(dout) <= budget:
        return dout
    for tn in (2048, 1024, 512, 256, 128):
        if dout % tn == 0 and live(tn) <= budget:
            return tn
    return 128 if dout % 128 == 0 else dout


def _q_tile(seq, d, num_heads, budget, *, want_splits=1):
    """Query tile for attention, sized from the per-generation VMEM budget (the (H,TQ,S)
    attention-weights block and resident K/V dominate)."""
    def live(tq):
        return (2 * tq * d * 4                    # q tile (f32 slab)
                + 2 * 2 * seq * d * 4             # resident K/V (double-buffered)
                + 2 * d * d * 2 + 2 * d * 4       # resident wo (bf16) + bias
                + 2 * tq * d * 4                  # fc_out output tile
                + 2 * num_heads * tq * seq * 4    # attention-weights output tile
                + 4 * num_heads * tq * seq * 4)   # in-kernel softmax temporaries
    best = None
    for tq in (512, 256, 128, 64, 32, 16, 8):
        if tq <= seq and seq % tq == 0 and live(tq) <= budget:
            if best is None:
                best = tq
            if seq // tq >= want_splits:
                return tq
    # TODO(synk): if even TQ=8 overflows (huge S), add a KV-tile grid axis + online softmax.
    return best if best is not None else seq


def _compiler_params(semantics, budget):
    return pltpu.CompilerParams(
        dimension_semantics=semantics, vmem_limit_bytes=int(budget)
    )


# ----------------------------- Pallas kernels ------------------------------

def _qkv_kernel(x_ref, w_ref, b_ref, o_ref):
    # x: (TM, Din) f32; w: (3, Din, TN) bf16 (pre-transposed in wrapper); b: (3, 1, TN) f32;
    # o: (3, TM, TN) f32.  One activation-tile read feeds all three projections.
    # MXU operands are bf16 with f32 accumulation.
    x = x_ref[...].astype(jnp.bfloat16)
    for j in range(3):                      # static unroll over Q/K/V
        o_ref[j] = (
            jnp.dot(x, w_ref[j], preferred_element_type=jnp.float32) + b_ref[j]
        )


def _attn_fcout_kernel(q_ref, k_ref, v_ref, wo_ref, bo_ref, o_ref, w_ref, *, num_heads):
    # q: (TQ, D) f32; k/v: (S, D) f32 (resident per batch); wo: (D, D) bf16; bo: (1, D) f32;
    # o: (TQ, D) f32; w: (H, TQ, S) f32 attention weights.
    # The score scale is already folded into the Q projection weights (wrapper).
    TQ, D = q_ref.shape
    S = k_ref.shape[0]
    H = num_heads
    hd = D // H
    bf16 = jnp.bfloat16

    # Split heads with one in-VMEM reshape + transpose (no per-head lane-offset slices,
    # no H tiny matmuls): a single batched MXU call covers all heads.
    qh = jnp.swapaxes(q_ref[...].reshape(TQ, H, hd), 0, 1).astype(bf16)   # (H, TQ, hd)
    kh = jnp.swapaxes(k_ref[...].reshape(S, H, hd), 0, 1).astype(bf16)    # (H, S, hd)
    vh = jnp.swapaxes(v_ref[...].reshape(S, H, hd), 0, 1).astype(bf16)    # (H, S, hd)

    s = jnp.einsum("hqd,hkd->hqk", qh, kh,
                   preferred_element_type=jnp.float32)                    # (H, TQ, S)
    m = jnp.max(s, axis=-1, keepdims=True)
    e = jnp.exp(s - m)
    denom = jnp.sum(e, axis=-1, keepdims=True)
    # Exact reciprocal on the small (H, TQ, 1) denominator: returned weights are exactly
    # normalized (rows sum to 1), unlike the previous approx-reciprocal version.
    p = e * (1.0 / denom)
    w_ref[...] = p                                                        # store weights first

    pv = jnp.einsum("hqk,hkd->hqd", p.astype(bf16), vh,
                    preferred_element_type=jnp.float32)                   # (H, TQ, hd)
    weighted = jnp.swapaxes(pv, 0, 1).reshape(TQ, D)                      # merge heads

    # Fused fc_out epilogue: the (B*S, D) weighted intermediate never touches HBM.
    o_ref[...] = (
        jnp.dot(weighted.astype(bf16), wo_ref[...],
                preferred_element_type=jnp.float32)
        + bo_ref[...]
    )


# ----------------------------- wrappers -------------------------------------

def pallas_qkv_proj(x2d, w_qkv_t, b_qkv, *, budget):
    """Fused Q/K/V projection.  x2d: (M, Din) f32; w_qkv_t: (3, Din, Dout) bf16;
    b_qkv: (3, 1, Dout) f32 -> (3, M, Dout) f32."""
    M, Din = x2d.shape
    Dout = w_qkv_t.shape[-1]
    TM = _row_tile(M, Din, budget)
    TN = _col_tile(Dout, Din, TM, budget)
    grid = (M // TM, Dout // TN)
    return pl.pallas_call(
        _qkv_kernel,
        out_shape=jax.ShapeDtypeStruct((3, M, Dout), jnp.float32),
        grid=grid,
        in_specs=[
            pl.BlockSpec((TM, Din), lambda i, j: (i, 0)),        # resident across j
            pl.BlockSpec((3, Din, TN), lambda i, j: (0, 0, j)),  # weight streamed over N
            pl.BlockSpec((3, 1, TN), lambda i, j: (0, 0, j)),
        ],
        out_specs=pl.BlockSpec((3, TM, TN), lambda i, j: (0, i, j)),
        compiler_params=_compiler_params(("parallel", "parallel"), budget),
    )(x2d, w_qkv_t, b_qkv)


def pallas_attention_fcout(qkv, wo_t, bo, batch, seq, num_heads, *, budget):
    """Attention + fused fc_out.  qkv: (3, B*S, D) f32; wo_t: (D, D) bf16; bo: (1, D) f32.
    Returns out2d: (B*S, D) f32 and attention weights: (B, H, S, S) f32."""
    D = qkv.shape[-1]
    TQ = _q_tile(seq, D, num_heads, budget,
                 want_splits=(1 if batch >= 2 else 2))   # keep both v7x cores busy
    nQ = seq // TQ
    kernel = functools.partial(_attn_fcout_kernel, num_heads=num_heads)

    q_spec = pl.BlockSpec((None, TQ, D), lambda b, qi: (0, b * nQ + qi, 0))
    k_spec = pl.BlockSpec((None, seq, D), lambda b, qi: (1, b, 0))   # resident across qi
    v_spec = pl.BlockSpec((None, seq, D), lambda b, qi: (2, b, 0))   # resident across qi
    wo_spec = pl.BlockSpec((D, D), lambda b, qi: (0, 0))             # VMEM-resident (bf16)
    bo_spec = pl.BlockSpec((1, D), lambda b, qi: (0, 0))

    return pl.pallas_call(
        kernel,
        out_shape=(
            jax.ShapeDtypeStruct((batch * seq, D), jnp.float32),
            jax.ShapeDtypeStruct((batch, num_heads, seq, seq), jnp.float32),
        ),
        grid=(batch, nQ),
        in_specs=[q_spec, k_spec, v_spec, wo_spec, bo_spec],
        out_specs=(
            pl.BlockSpec((TQ, D), lambda b, qi: (b * nQ + qi, 0)),
            pl.BlockSpec((None, num_heads, TQ, seq), lambda b, qi: (b, 0, qi, 0)),
        ),
        compiler_params=_compiler_params(("parallel", "parallel"), budget),
    )(qkv, qkv, qkv, wo_t, bo)


def multi_head_attention(x, params, num_heads):
    """Pallas implementation of MultiHeadAttention.forward.

    x: (B, S, D) float32.  Returns (out: (B, S, D), attention_weights: (B, H, S, S)).
    """
    B, S, D = x.shape
    assert D % num_heads == 0
    budget = _vmem_budget_bytes()
    x2d = x.reshape(B * S, D)   # free reshape; no HBM transposes anywhere in the pipeline

    scale = 1.0 / math.sqrt(D)  # NOTE: module scales by sqrt(input_dim), not head_dim.
    # Fold the score scale into the Q projection (exact), pre-transpose weights once to
    # (Din, Dout) so in-kernel matmuls are plain (M,K)@(K,N), and cast weights to bf16
    # once (MXU-native on v5e/v6e/v7x; accumulation stays f32 in-kernel).
    w_qkv_t = jnp.transpose(
        jnp.stack([params["wq"] * scale, params["wk"], params["wv"]]), (0, 2, 1)
    ).astype(jnp.bfloat16)                                                        # (3, Din, Dout)
    b_qkv = jnp.stack(
        [params["bq"] * scale, params["bk"], params["bv"]]
    )[:, None, :]                                                                 # (3, 1, Dout) f32
    wo_t = params["wo"].T.astype(jnp.bfloat16)                                    # (Din, Dout)
    bo = params["bo"].reshape(1, D)                                               # (1, Dout) f32

    qkv = pallas_qkv_proj(x2d, w_qkv_t, b_qkv, budget=budget)                     # (3, B*S, D) f32
    out2d, attn = pallas_attention_fcout(qkv, wo_t, bo, B, S, num_heads, budget=budget)
    return out2d.reshape(B, S, D), attn


# ----------------------------- reference (pure JAX) -------------------------

def reference_mha(x, params, num_heads):
    B, S, D = x.shape
    hd = D // num_heads
    Q = x @ params["wq"].T + params["bq"]
    K = x @ params["wk"].T + params["bk"]
    V = x @ params["wv"].T + params["bv"]
    Q = Q.reshape(B, S, num_heads, hd).transpose(0, 2, 1, 3)
    K = K.reshape(B, S, num_heads, hd).transpose(0, 2, 1, 3)
    V = V.reshape(B, S, num_heads, hd).transpose(0, 2, 1, 3)
    scores = jnp.einsum("bhqd,bhkd->bhqk", Q, K) / math.sqrt(D)
    attn = jax.nn.softmax(scores, axis=-1)
    ws = jnp.einsum("bhqk,bhkd->bhqd", attn, V)
    ws = ws.transpose(0, 2, 1, 3).reshape(B, S, D)
    out = ws @ params["wo"].T + params["bo"]
    return out, attn


# ----------------------------- main -----------------------------------------

def init_params(key, input_dim):
    """Deterministic nn.Linear-style init: U(-1/sqrt(in), 1/sqrt(in))."""
    bound = 1.0 / math.sqrt(input_dim)
    keys = jax.random.split(key, 8)

    def u(k, shape):
        return jax.random.uniform(k, shape, jnp.float32, -bound, bound)

    return {
        "wq": u(keys[0], (input_dim, input_dim)), "bq": u(keys[1], (input_dim,)),
        "wk": u(keys[2], (input_dim, input_dim)), "bk": u(keys[3], (input_dim,)),
        "wv": u(keys[4], (input_dim, input_dim)), "bv": u(keys[5], (input_dim,)),
        "wo": u(keys[6], (input_dim, input_dim)), "bo": u(keys[7], (input_dim,)),
    }


if __name__ == "__main__":
    B, S, D, H = 2, 8, 32, 4

    root = jax.random.PRNGKey(0)
    k_x, k_p = jax.random.split(root)
    x = jax.random.normal(k_x, (B, S, D), dtype=jnp.float32)
    params = init_params(k_p, D)

    out, attn_w = multi_head_attention(x, params, H)
    out = jax.block_until_ready(out)
    attn_w = jax.block_until_ready(attn_w)

    ref_out, ref_attn = reference_mha(x, params, H)
    assert out.shape == (B, S, D)
    assert attn_w.shape == (B, H, S, S)
    # MXU operands are bf16 (f32 accumulation) per the perf review; tolerances are loosened
    # deliberately vs. the pure-f32 PyTorch module (observed error ~1e-3 at these shapes).
    assert jnp.allclose(out, ref_out, atol=2e-2, rtol=2e-2), \
        float(jnp.max(jnp.abs(out - ref_out)))
    assert jnp.allclose(attn_w, ref_attn, atol=2e-2, rtol=2e-2), \
        float(jnp.max(jnp.abs(attn_w - ref_attn)))

    print("KERNEL_OK")
</pallas_src>

<mosaic_0001>
module attributes {stable_mosaic.version = 11 : i64} {
  func.func @_qkv_kernel(%arg0: i32, %arg1: i32, %arg2: memref<8x32xf32, #tpu.memory_space<vmem>>, %arg3: memref<3x32x32xbf16, #tpu.memory_space<vmem>>, %arg4: memref<3x1x32xf32, #tpu.memory_space<vmem>>, %arg5: memref<3x8x32xf32, #tpu.memory_space<vmem>>) attributes {dimension_semantics = [#tpu.dimension_semantics<parallel>, #tpu.dimension_semantics<parallel>], iteration_bounds = array<i64: 2, 1>, scalar_prefetch = 0 : i64, scratch_operands = 0 : i64, tpu.core_type = #tpu.core_type<tc>, window_params = [{transform_indices = @transform_0, window_bounds = array<i64: 8, 32>}, {transform_indices = @transform_1, window_bounds = array<i64: 3, 32, 32>}, {transform_indices = @transform_2, window_bounds = array<i64: 3, 1, 32>}, {transform_indices = @transform_3, window_bounds = array<i64: 3, 8, 32>}]} {
    %c0 = arith.constant 0 : index
    %c0_0 = arith.constant 0 : index
    %0 = vector.load %arg2[%c0, %c0_0] : memref<8x32xf32, #tpu.memory_space<vmem>>, vector<8x32xf32>
    %1 = arith.truncf %0 : vector<8x32xf32> to vector<8x32xbf16>
    %c0_1 = arith.constant 0 : index
    %c0_2 = arith.constant 0 : index
    %c0_3 = arith.constant 0 : index
    %2 = vector.load %arg3[%c0_1, %c0_2, %c0_3] : memref<3x32x32xbf16, #tpu.memory_space<vmem>>, vector<1x32x32xbf16>
    %3 = vector.shape_cast %2 : vector<1x32x32xbf16> to vector<32x32xbf16>
    %cst = arith.constant dense<0.000000e+00> : vector<8x32xf32>
    %4 = tpu.matmul %1, %3, %cst {dimension_numbers = #tpu.dot_dimension_numbers<[1], [0], [0], [1], [0, 0, 1, 1], [], []>} : vector<8x32xbf16>, vector<32x32xbf16>, vector<8x32xf32> -> vector<8x32xf32>
    %c0_4 = arith.constant 0 : index
    %c0_5 = arith.constant 0 : index
    %c0_6 = arith.constant 0 : index
    %5 = vector.load %arg4[%c0_4, %c0_5, %c0_6] : memref<3x1x32xf32, #tpu.memory_space<vmem>>, vector<1x1x32xf32>
    %6 = vector.shape_cast %5 : vector<1x1x32xf32> to vector<1x32xf32>
    %7 = vector.broadcast %6 : vector<1x32xf32> to vector<8x32xf32>
    %8 = arith.addf %4, %7 : vector<8x32xf32>
    %c0_7 = arith.constant 0 : index
    %c0_8 = arith.constant 0 : index
    %c0_9 = arith.constant 0 : index
    %9 = vector.load %arg5[%c0_7, %c0_8, %c0_9] : memref<3x8x32xf32, #tpu.memory_space<vmem>>, vector<1x8x32xf32>
    %10 = vector.shape_cast %9 : vector<1x8x32xf32> to vector<8x32xf32>
    %11 = vector.shape_cast %8 : vector<8x32xf32> to vector<1x8x32xf32>
    tpu.vector_store %arg5[%c0_7, %c0_8, %c0_9], %11 {strides = array<i32>} : memref<3x8x32xf32, #tpu.memory_space<vmem>>, vector<1x8x32xf32>,
    %c1 = arith.constant 1 : index
    %c0_10 = arith.constant 0 : index
    %c0_11 = arith.constant 0 : index
    %12 = vector.load %arg3[%c1, %c0_10, %c0_11] : memref<3x32x32xbf16, #tpu.memory_space<vmem>>, vector<1x32x32xbf16>
    %13 = vector.shape_cast %12 : vector<1x32x32xbf16> to vector<32x32xbf16>
    %cst_12 = arith.constant dense<0.000000e+00> : vector<8x32xf32>
    %14 = tpu.matmul %1, %13, %cst_12 {dimension_numbers = #tpu.dot_dimension_numbers<[1], [0], [0], [1], [0, 0, 1, 1], [], []>} : vector<8x32xbf16>, vector<32x32xbf16>, vector<8x32xf32> -> vector<8x32xf32>
    %c1_13 = arith.constant 1 : index
    %c0_14 = arith.constant 0 : index
    %c0_15 = arith.constant 0 : index
    %15 = vector.load %arg4[%c1_13, %c0_14, %c0_15] : memref<3x1x32xf32, #tpu.memory_space<vmem>>, vector<1x1x32xf32>
    %16 = vector.shape_cast %15 : vector<1x1x32xf32> to vector<1x32xf32>
    %17 = vector.broadcast %16 : vector<1x32xf32> to vector<8x32xf32>
    %18 = arith.addf %14, %17 : vector<8x32xf32>
    %c1_16 = arith.constant 1 : index
    %c0_17 = arith.constant 0 : index
    %c0_18 = arith.constant 0 : index
    %19 = vector.load %arg5[%c1_16, %c0_17, %c0_18] : memref<3x8x32xf32, #tpu.memory_space<vmem>>, vector<1x8x32xf32>
    %20 = vector.shape_cast %19 : vector<1x8x32xf32> to vector<8x32xf32>
    %21 = vector.shape_cast %18 : vector<8x32xf32> to vector<1x8x32xf32>
    tpu.vector_store %arg5[%c1_16, %c0_17, %c0_18], %21 {strides = array<i32>} : memref<3x8x32xf32, #tpu.memory_space<vmem>>, vector<1x8x32xf32>,
    %c2 = arith.constant 2 : index
    %c0_19 = arith.constant 0 : index
    %c0_20 = arith.constant 0 : index
    %22 = vector.load %arg3[%c2, %c0_19, %c0_20] : memref<3x32x32xbf16, #tpu.memory_space<vmem>>, vector<1x32x32xbf16>
    %23 = vector.shape_cast %22 : vector<1x32x32xbf16> to vector<32x32xbf16>
    %cst_21 = arith.constant dense<0.000000e+00> : vector<8x32xf32>
    %24 = tpu.matmul %1, %23, %cst_21 {dimension_numbers = #tpu.dot_dimension_numbers<[1], [0], [0], [1], [0, 0, 1, 1], [], []>} : vector<8x32xbf16>, vector<32x32xbf16>, vector<8x32xf32> -> vector<8x32xf32>
    %c2_22 = arith.constant 2 : index
    %c0_23 = arith.constant 0 : index
    %c0_24 = arith.constant 0 : index
    %25 = vector.load %arg4[%c2_22, %c0_23, %c0_24] : memref<3x1x32xf32, #tpu.memory_space<vmem>>, vector<1x1x32xf32>
    %26 = vector.shape_cast %25 : vector<1x1x32xf32> to vector<1x32xf32>
    %27 = vector.broadcast %26 : vector<1x32xf32> to vector<8x32xf32>
    %28 = arith.addf %24, %27 : vector<8x32xf32>
    %c2_25 = arith.constant 2 : index
    %c0_26 = arith.constant 0 : index
    %c0_27 = arith.constant 0 : index
    %29 = vector.load %arg5[%c2_25, %c0_26, %c0_27] : memref<3x8x32xf32, #tpu.memory_space<vmem>>, vector<1x8x32xf32>
    %30 = vector.shape_cast %29 : vector<1x8x32xf32> to vector<8x32xf32>
    %31 = vector.shape_cast %28 : vector<8x32xf32> to vector<1x8x32xf32>
    tpu.vector_store %arg5[%c2_25, %c0_26, %c0_27], %31 {strides = array<i32>} : memref<3x8x32xf32, #tpu.memory_space<vmem>>, vector<1x8x32xf32>,
    return
  }
  func.func @transform_0(%arg0: i32, %arg1: i32) -> (i32, i32) {
    %c0_i32 = arith.constant 0 : i32
    %c0_i32_0 = arith.constant 0 : i32
    return %arg0, %c0_i32 : i32, i32
  }
  func.func @transform_1(%arg0: i32, %arg1: i32) -> (i32, i32, i32) {
    %c0_i32 = arith.constant 0 : i32
    %c0_i32_0 = arith.constant 0 : i32
    %c0_i32_1 = arith.constant 0 : i32
    return %c0_i32, %c0_i32_0, %arg1 : i32, i32, i32
  }
  func.func @transform_2(%arg0: i32, %arg1: i32) -> (i32, i32, i32) {
    %c0_i32 = arith.constant 0 : i32
    %c0_i32_0 = arith.constant 0 : i32
    %c0_i32_1 = arith.constant 0 : i32
    return %c0_i32, %c0_i32_0, %arg1 : i32, i32, i32
  }
  func.func @transform_3(%arg0: i32, %arg1: i32) -> (i32, i32, i32) {
    %c0_i32 = arith.constant 0 : i32
    %c0_i32_0 = arith.constant 0 : i32
    return %c0_i32, %arg0, %arg1 : i32, i32, i32
  }
}

</mosaic_0001>

<bundles_post_ra>
// kernel: tpu_custom_call.1
= control target key start
LH: loop header
LB: loop body
LE: loop exit
PB: predicated region body
PF: predicated region fallthrough
CT: control target
= control target key end

     0   :  { %8 = vsyncpa [#allocation3], 0  ;;  %s1081_s0 = inlined_call_operand.hbm [shape: f32[16,32], index: 0, kind: input, shape index: {}]   ;;  %s1082_s1 = inlined_call_operand.hbm [shape: bf16[3,32,32], index: 1, kind: input, shape index: {}]   ;;  %s1083_s2 = inlined_call_operand.vmem [shape: f32[3,1,32], index: 2, kind: input, shape index: {}]   ;;  %s1084_s3 = inlined_call_operand.hbm [shape: f32[3,16,32], index: 3, kind: output, shape index: {}]  }
   0x1   :  { %10 = vsyncpa [#allocation3 + $0x1], 0 }
   0x2   :  { %11 = vsyncpa [#allocation6], 0 }
   0x3   :  { %12 = vsyncpa [#allocation4], 0 }
   0x4   :  { %14 = vsyncpa [#allocation4 + $0x1], 0  ;;  %s881_s12 = smov 0   ;;  %s883_s13 = smov 0  }
   0x5   :  { %s885_s14 = smov 0   ;;  %s887_s15 = smov 0  }
   0x6   :  { %s889_s16 = smov 0   ;;  %s891_s17 = smov 0  }
   0x7 LB: > { %s561_s18 = sadd.s32 4294967295, %s849_s17   ;;  %s562_s19 = sadd.s32 4294967294, %s849_s17   ;;  %s849_s17 = sphi %s891_s17, %s20_s17   ;;  %s845_s16 = sphi %s889_s16, %s1102_s16   ;;  %s841_s15 = sphi %s887_s15, %s1101_s15   ;;  %s837_s14 = sphi %s885_s14, %s1100_s14   ;;  %s833_s13 = sphi %s883_s13, %s1099_s13   ;;  %s829_s12 = sphi %s881_s12, %s1098_s12  }
   0x8   : > { %p52_p0 = scmp.ne.s32.totalorder %s833_s13, %s829_s12  ;;  %p915_p1 = scmp.eq.s32.totalorder %s561_s18, 0 }
   0x9   : > { %p919_p2 = scmp.eq.s32.totalorder %s561_s18, 1  ;;  %p136_p3 = scmp.eq.s32.totalorder %s562_s19, 1 }
   0xa   : > { %p925_p4 = por %p915_p1, %p52_p0  ;;  %p563_p5 = scmp.ge.s32.totalorder %s849_s17, 1 }
   0xb   : > { %p930_p6 = por %p136_p3, %p52_p0  ;;  %p143_p7 = scmp.lt.s32.totalorder %s849_s17, 3 }
   0xc   : > { %s1088_s22 = scalar_select %p925_p4, 1, 0 }
   0xd   : > { %s1089_s23 = scalar_select %p930_p6, 1, 0 }
   0xe   : > { %p935_p8 = pnand %p563_p5, %p143_p7  ;;  %s851_s25 = smov [#allocation5]  }
   0xf   : > { %s157_s26 = sshll.u32 %s851_s25, 4  ;;  %s32_s28 = sadd.s32 1, %s845_s16  ;;  %s158_s26 = int_to_ptr.vmem [resolvable:$true] %s157_s26 }
  0x10   : > { %p633_p9 = pneg %p935_p8  ;;  %s722_s29 = scalar_lea.vmem %s158_s26, 768 }
  0x11   : > { %p723_p13 = scmp.ne.s32.totalorder %s158_s26, %s722_s29  ;;  %p730_p5 = scmp.lt.s32.totalorder %s158_s26, %s158_s26 }
  0x12   : > { %p944_p11 = pnand %p633_p9, %p915_p1  ;;  %p731_p7 = scmp.lt.s32.totalorder %s722_s29, %s722_s29 }
  0x14   : > { %p713_p12 = pneg %p944_p11  ;;  %p732_p6 = por %p731_p7, %p730_p5 }
  0x16   : > { %p725_p0 = pnand %p723_p13, %p713_p12 }
  0x18   : > { %p726_p3 = pneg %p725_p0 }
  0x1a   : > { %p733_p4 = pnand %p732_p6, %p726_p3 }
  0x1c   : > { %736 = shalt.err (!%p733_p4)
}
  0x1d   : > { %s852_s30 = smov 64   ;;  %s853_s4 = smov 4  }
  0x1e   : > { %636 = dma.hbm_to_vmem [thread:$0]  (!%p944_p11), %s1082_s1, 768, %s158_s26, [#allocation6], %s852_s30, %s852_s30, %s853_s4  }
  0x1f   : > { %p34_p6 = scmp.ge.s32.totalorder %s32_s28, 2  ;;  %s39_s7 = sadd.s32 1, %s837_s14 }
  0x20   : > { %p46_p4 = scmp.ne.s32.totalorder %s837_s14, %s833_s13  ;;  %p47_p9 = scmp.eq.s32.totalorder %s849_s17, 0 }
  0x21   : > { %s1104_s28 = smov (%p34_p6, %s32_s28), 0  ;;  %p646_p0 = scmp.lt.s32.totalorder %s849_s17, 2 }
  0x22   : > { %p962_p12 = por %p47_p9, %p46_p4  ;;  %p968_p13 = por %p919_p2, %p46_p4 }
  0x23   : > { %s36_s10 = ssub.s32 %s845_s16, %s1104_s28  ;;  %s177_s11 = sand.u32 1, %s837_s14  }
  0x24   : > { %p37_p11 = scmp.eq.s32.totalorder %s36_s10, 0  ;;  %s567_s18 = sshll.u32 %s177_s11, 3 }
  0x25   : > { %s568_s25 = sshll.u32 %s845_s16, 7  ;;  %s181_s30 = scalar_lea.vmem [#allocation2], %s567_s18 }
  0x26   : > { %s977_s19 = scalar_select %p37_p11, %s837_s14, %s39_s7  }
  0x27   : > { %s186_s29 = scalar_lea.hbm %s1081_s0, %s568_s25  ;;  %s188_s4 = sshll.u32 %s181_s30, 4  ;;  %s189_s4 = int_to_ptr.vmem [resolvable:$true] %s188_s4 }
  0x28   : > { %p985_p2 = pnand %p646_p0, %p962_p12  ;;  %s178_s5 = scalar_lea.sflag [#allocation3], %s177_s11 }
  0x29   : > { %s750_s6 = scalar_lea.vmem %s189_s4, 128  ;;  %s854_s7 = smov [#allocation2]  }
  0x2a   : > { %p739_p3 = pneg %p985_p2  ;;  %p751_p5 = scmp.ne.s32.totalorder %s189_s4, %s750_s6 }
  0x2b   : > { %s755_s10 = sshll.u32 %s854_s7, 4  ;;  %s756_s10 = int_to_ptr.vmem [resolvable:$false] %s755_s10 }
  0x2c   : > { %p753_p7 = pnand %p751_p5, %p739_p3  ;;  %s757_s25 = scalar_lea.vmem %s756_s10, 256 }
  0x2d   : > { %p758_p4 = scmp.lt.s32.totalorder %s189_s4, %s756_s10  ;;  %p759_p9 = scmp.lt.s32.totalorder %s757_s25, %s750_s6 }
  0x2e   : > { %p754_p6 = pneg %p753_p7 }
  0x2f   : > { %p760_p11 = por %p759_p9, %p758_p4 }
  0x31   : > { %p761_p10 = pnand %p760_p11, %p754_p6 }
  0x33   : > { %764 = shalt.err (!%p761_p10)
}
  0x34   : > { %640 = dma.hbm_to_vmem [thread:$0]  (!%p985_p2), %s186_s29, 128, %s189_s4, %s178_s5  }
  0x35   : > { %197 = sbr.rel (%p935_p8) target bundleno = 290 (0x122), region = 32  ;;  %s996_s8 = sand.u32 (!%p935_p8), 1, %s833_s13  }
  0x36   : > { %s570_s11 = sshll.u32 (!%p935_p8), %s996_s8, 3  ;;  %s200_s18 = scalar_lea.sflag (!%p935_p8), [#allocation3], %s996_s8 }
  0x37   : > { %s203_s26 = scalar_lea.vmem (!%p935_p8), [#allocation2], %s570_s11  ;;  %p1095_p12 = scmp.ne.s32.totalorder (!%p935_p8), %s1088_s22, 0 }
  0x3a   : > { %816 = dma.done.wait (%p1095_p12), %s200_s18, 128  }
  0x3b   : > { %818 = vsyncadd (%p1095_p12), %s200_s18, 4294967168 }
  0x3c   : > { %820 = dma.done.wait (%p915_p1), [#allocation6], 768  }
  0x3d   : > { %822 = vsyncadd (%p915_p1), [#allocation6], 4294966528  ;;  %v855_v0 = vmov 0.0   ;;  %vm856_vm0 = vmmov 0   ;;  %v705_v1 = vld [vmem:[#allocation5 + $0x8] sm:$0xff]   ;;  %v706_v2 = vld [vmem:[#allocation5 + $0x18] sm:$0xff]  }
  0x3e   : > { %600 = vmatprep.subr.bf16.mxu0 %v855_v0  ;;  %608 = vmatprep.subr.bf16.mxu1 %v855_v0  ;;  %v707_v3 = vld [vmem:[#allocation5] sm:$0xff]   ;;  %v237_v4 = vld [vmem:[%s203_s26] sm:$0xff]  ;;  %vm262_vm1 = vcmask 261120   ;;  %v709_v7 = vld [vmem:[#allocation5 + $0x28] sm:$0xff]   ;;  %s624_s20 = smul.u32 24, %s996_s8  ;;  %s588_s21 = sshll.u32 %s841_s15, 7 }
  0x3f   : > { %604 = vmatprep.mubr.msk.bf16.mxu0 %vm856_vm0, %v855_v0  ;;  %612 = vmatprep.mubr.msk.bf16.mxu1 %vm856_vm0, %v855_v0  ;;  %v708_v5 = vld [vmem:[#allocation5 + $0x10] sm:$0xff]   ;;  %v238_v6 = vpack.c.bf16 %v237_v4, %v237_v4  ;;  %v710_v8 = vld [vmem:[#allocation5 + $0x20] sm:$0xff]   ;;  %s1032_s25 = scalar_lea.hbm %s1084_s3, %s588_s21  ;;  %s442_s15 = scalar_lea.sflag [#allocation4], %s996_s8 }
  0x40   : > { %601 = vmatpush3.bf16.msra.mxu0 %v705_v1  ;;  %609 = vmatpush3.bf16.msra.mxu1 %v706_v2  ;;  %v572_v9 = vld [vmem:[%s1083_s2] ss:$0 sm:$0xff]  ;;  %v577_v10 = vld [vmem:[%s1083_s2 + $0x1] ss:$0 sm:$0xff]  ;;  %s232_s30 = scalar_lea.vmem [#allocation7], %s624_s20  ;;  %s857_s18 = smov [#allocation7]  }
  0x41   : > { %602 = vmatprep.subr.bf16.mxu0 %v855_v0  ;;  %610 = vmatprep.subr.bf16.mxu1 %v855_v0  ;;  %s455_s4 = sshll.u32 %s232_s30, 4  ;;  %v583_v20 = vld [vmem:[%s1083_s2 + $0x2] ss:$0 sm:$0xff]  ;;  %s769_s26 = sshll.u32 %s857_s18, 4  ;;  %s1027_s4 = int_to_ptr.vmem [resolvable:$true] %s455_s4  ;;  %s770_s26 = int_to_ptr.vmem [resolvable:$false] %s769_s26 }
  0x42   : > { %s765_s11 = scalar_lea.vmem %s1027_s4, 384  ;;  %s771_s20 = scalar_lea.vmem %s770_s26, 768 }
  0x43   : > { %p766_p1 = scmp.ne.s32.totalorder %s1027_s4, %s765_s11  ;;  %p772_p0 = scmp.lt.s32.totalorder %s1027_s4, %s770_s26 }
  0x44   : > { %603 = vmatpush3.bf16.msra.mxu0 %v707_v3  ;;  %611 = vmatpush3.bf16.msra.mxu1 %v708_v5  ;;  %p773_p2 = scmp.lt.s32.totalorder %s771_s20, %s765_s11 }
  0x45   : > { %616 = vmatprep.subr.bf16.mxu0 %v855_v0  ;;  %p767_p8 = pnand %p766_p1, %p968_p13 }
  0x46   : > { %p774_p3 = por %p773_p2, %p772_p0 }
  0x47   : > { %605 = vmatmul.mubr.msk.bf16.vlgmr.msra.gmra.mxu0 %vm262_vm1, %v238_v6  ;;  %613 = vmatmul.mubr.msk.bf16.vlgmr.msra.gmra.mxu1 %vm262_vm1, %v238_v6  ;;  %p768_p10 = pneg %p767_p8 }
  0x48   : > { %617 = vmatpush3.bf16.msra.mxu0 %v709_v7  ;;  %620 = vmatprep.mubr.msk.bf16.mxu0 %vm856_vm0, %v855_v0 }
  0x49   : > { %618 = vmatprep.subr.bf16.mxu0 %v855_v0  ;;  %p775_p5 = pnand %p774_p3, %p768_p10 }
  0x4c   : > { %619 = vmatpush3.bf16.msra.mxu0 %v710_v8 }
  0x4f   : > { %621 = vmatmul.mubr.msk.bf16.vlgmr.msra.gmra.mxu0 %vm262_vm1, %v238_v6 }
 0x107   : > { %v300_v11 = vpop.f32.mrf.mxu0  ;;  %v366_v13 = vpop.f32.mrf.mxu1 }
 0x108   : > { %v301_v12 = vadd.f32 %v572_v9, %v300_v11  ;;  %v367_v15 = vadd.f32 %v577_v10, %v366_v13 }
 0x109   : > { %v606_v14 = vpop.f32.mrf.mxu0  ;;  %v614_v16 = vpop.f32.mrf.mxu1 }
 0x10a   : > { %306 = vst.msk [vmem:[%s232_s30] sm:$0xff] %vm262_vm1, %v301_v12  ;;  %581 = vst.msk [vmem:[%s232_s30 + $0x8] sm:$0xff] %vm262_vm1, %v367_v15 }
 0x10b   : > { %v303_v17 = vpop.f32.mrf.mxu0  ;;  %v369_v18 = vpop.f32.mrf.mxu1 }
 0x10d   : > { %v607_v19 = vpop.f32.mrf.mxu0  ;;  %v615_v21 = vpop.f32.mrf.mxu1 }
 0x10f   : > { %v433_v22 = vpop.f32.mrf.mxu0 }
 0x110   : > { %v434_v23 = vadd.f32 %v583_v20, %v433_v22 }
 0x111   : > { %v622_v24 = vpop.f32.mrf.mxu0 }
 0x112   : > { %587 = vst.msk [vmem:[%s232_s30 + $0x10] sm:$0xff] %vm262_vm1, %v434_v23 }
 0x113   : > { %v436_v25 = vpop.f32.mrf.mxu0 }
 0x114   : > { %778 = shalt.err (!%p775_p5)
}
 0x115   : > { %s779_s22 = scalar_lea.hbm %s1032_s25, 384  ;;  %s783_s29 = scalar_lea.hbm %s1084_s3, 768 }
 0x116   : > { %p780_p7 = scmp.ne.s32.totalorder %s1032_s25, %s779_s22  ;;  %p784_p9 = scmp.lt.s32.totalorder %s1032_s25, %s1084_s3 }
 0x117   : > { %p785_p11 = scmp.lt.s32.totalorder %s783_s29, %s779_s22 }
 0x118   : > { %p781_p6 = pnand %p780_p7, %p968_p13 }
 0x119   : > { %p786_p12 = por %p785_p11, %p784_p9 }
 0x11a   : > { %p782_p4 = pneg %p781_p6 }
 0x11c   : > { %p787_p1 = pnand %p786_p12, %p782_p4 }
 0x11e   : > { %790 = shalt.err (!%p787_p1)
}
 0x11f   : > { %s858_s5 = smov 128   ;;  %s859_s6 = smov 256   ;;  %v623_v26 = vpop.f32.mrf.mxu0 }
 0x120   : > { %s860_s7 = smov 8  }
 0x121   : > { %631 = dma.vmem_to_hbm [thread:$0]  (%p968_p13), %s1027_s4, 384, %s1032_s25, %s442_s15, %s858_s5, %s859_s6, %s860_s7  }
 0x122 PF: > { %s470_s10 = sand.u32 1, %s829_s12   ;;  %p1096_p8 = scmp.ne.s32.totalorder %s1089_s23, 0 }
 0x123   : > { %p1097_p10 = scmp.ge.s32.totalorder %s849_s17, 2  ;;  %s471_s11 = scalar_lea.sflag [#allocation4], %s470_s10 }
 0x125   : > { %p642_p0 = pnand %p1097_p10, %p1096_p8 }
 0x127   : > { %p643_p2 = pneg %p642_p0 }
 0x129   : > { %824 = dma.done.wait (%p643_p2), %s471_s11, 384  }
 0x12a   : > { %826 = vsyncadd (%p643_p2), %s471_s11, 4294966912  ;;  %s20_s17 = sadd.s32 1, %s849_s17   ;;  %s1098_s12 = smov %s833_s13 }
 0x12b   : > { %p17_p3 = scmp.ge.s32.totalorder %s20_s17, 4   ;;  %s1099_s13 = smov %s837_s14 }
 0x12c   : > { %s1100_s14 = smov %s977_s19  ;;  %s1101_s15 = smov %s845_s16 }
 0x12d   : > { %s1102_s16 = smov %s1104_s28  ;;  %19 = sbr.rel (!%p17_p3) target bundleno = 7 (0x7), region = 91 }
 0x132   :  { %476 = vsyncpa [#allocation3], 1 }
 0x133   :  { %478 = vsyncpa [#allocation3 + $0x1], 1 }
 0x134   :  { %479 = vsyncpa [#allocation6], 1 }
 0x135   :  { %480 = vsyncpa [#allocation4], 1 }
 0x136   :  { %482 = vsyncpa [#allocation4 + $0x1], 1 }

</bundles_post_ra>
